<compile_context>
chip_gen: v7x
topology: tpu7x:2x2x1
jax: 0.10.0
libtpu: 0.0.40
codegen_flags: <defaults>
</compile_context>

<pallas_src>
import jax
import jax.numpy as jnp
from jax.experimental import pallas as pl
from jax.experimental.pallas import tpu as pltpu


_LANES = 128
_MAX_BLOCK_BYTES = 2 * 1024 * 1024  # ~2 MiB real payload per block


def _round_up(x: int, m: int) -> int:
    return ((x + m - 1) // m) * m


def _cdiv(a: int, b: int) -> int:
    return (a + b - 1) // b


def make_mass_spring_damper_params(m: float = 1.0, d: float = 1.0, k: float = 1.0):
    """Deterministic parameter construction matching nn.Module.__init__."""
    return jnp.array([[0.0, 1.0], [-k / m, -d / m]], dtype=jnp.float32)


def mass_spring_damper_forward(t, y, m: float = 1.0, d: float = 1.0, k: float = 1.0):
    """Pallas equivalent of MassSpringDamperSystem.forward(t, y) for y of shape (N, 2)."""
    del t  # unused, exactly as in the reference module
    N, S = y.shape
    assert S == 2, "state dimension must be 2 (position, velocity)"

    neg_k_m = float(-k / m)  # trace-time constants, never DMA'd
    neg_d_m = float(-d / m)

    dtype = jnp.dtype(y.dtype)
    itemsize = dtype.itemsize
    # Minimal dense granule: (sublane_granule, 128) -> sublane granule grows for
    # sub-32-bit dtypes (bf16 packs 16 rows / vreg, int8 packs 32).
    sub_granule = 8 * max(1, 4 // itemsize)
    elem_granule = sub_granule * _LANES

    total = N * S
    padded_total = _round_up(total, elem_granule)  # pad to the *minimal* granule only

    # Free row-major view: flat = [pos0, vel0, pos1, vel1, ...]
    y_flat = y.reshape(total)
    if padded_total != total:
        y_flat = jnp.pad(y_flat, (0, padded_total - total))

    rows_total = padded_total // _LANES          # multiple of sub_granule
    y_2d = y_flat.reshape(rows_total, _LANES)    # even lanes = pos, odd lanes = vel

    # Block sizing: ~2 MiB of real payload, multiple of the sublane granule,
    # and at least 2 blocks whenever the data allows (megacore sharding).
    max_rows = max(sub_granule,
                   (_MAX_BLOCK_BYTES // (_LANES * itemsize)) // sub_granule * sub_granule)
    block_rows = min(max_rows, rows_total)
    if rows_total >= 2 * sub_granule:
        block_rows = min(block_rows, _round_up(_cdiv(rows_total, 2), sub_granule))
    num_blocks = _cdiv(rows_total, block_rows)   # ragged tail handled by Pallas masking

    def kernel(y_ref, o_ref):
        yb = y_ref[...].astype(jnp.float32)
        lane = jax.lax.broadcasted_iota(jnp.int32, yb.shape, dimension=1)
        is_even = (lane & 1) == 0
        # Lane rotations (XLU): pairs are lane-adjacent and never wrap across a row
        # at the lanes where each branch is selected.
        vel_at_even = pltpu.roll(yb, 127, axis=1)   # lane l <- yb[l+1]  (vel_j on even lanes)
        pos_at_odd = pltpu.roll(yb, 1, axis=1)      # lane l <- yb[l-1]  (pos_j on odd lanes)
        out = jnp.where(is_even, vel_at_even, neg_k_m * pos_at_odd + neg_d_m * yb)
        o_ref[...] = out.astype(o_ref.dtype)

    out_2d = pl.pallas_call(
        kernel,
        out_shape=jax.ShapeDtypeStruct((rows_total, _LANES), y.dtype),
        grid=(num_blocks,),
        in_specs=[pl.BlockSpec((block_rows, _LANES), lambda i: (i, 0))],
        out_specs=pl.BlockSpec((block_rows, _LANES), lambda i: (i, 0)),
        compiler_params=pltpu.CompilerParams(
            dimension_semantics=("parallel",),   # megacore-shardable on v7x
        ),
        cost_estimate=pl.CostEstimate(
            flops=3 * N,                          # 2 mul + 1 add per state
            transcendentals=0,
            bytes_accessed=4 * N * itemsize,      # read + write of (N, 2)
        ),
    )(y_2d)

    out_flat = out_2d.reshape(padded_total)
    if padded_total != total:
        out_flat = out_flat[:total]
    return out_flat.reshape(N, S)


if __name__ == "__main__":
    key = jax.random.PRNGKey(0)
    A = make_mass_spring_damper_params()
    t = jnp.float32(0.0)  # unused by the dynamics

    # Small shape consistent with the module: batch of 8 state vectors [pos, vel].
    batch, state_dim = 8, 2
    y = jax.random.normal(key, (batch, state_dim), dtype=jnp.float32)
    out = jax.block_until_ready(mass_spring_damper_forward(t, y))
    ref = y @ A.T
    assert out.shape == y.shape
    assert jnp.allclose(out, ref, atol=1e-5, rtol=1e-5), "mismatch vs reference (N=8)"

    # Second small check exercising the multi-block grid + ragged tail path.
    y2 = jax.random.normal(jax.random.PRNGKey(1), (777, state_dim), dtype=jnp.float32)
    out2 = jax.block_until_ready(mass_spring_damper_forward(t, y2))
    ref2 = y2 @ A.T
    assert out2.shape == y2.shape
    assert jnp.allclose(out2, ref2, atol=1e-5, rtol=1e-5), "mismatch vs reference (N=777)"

    print("KERNEL_OK")
</pallas_src>

<mosaic_0001>
module attributes {stable_mosaic.version = 11 : i64} {
  func.func @kernel(%arg0: i32, %arg1: memref<8x128xf32, #tpu.memory_space<vmem>>, %arg2: memref<8x128xf32, #tpu.memory_space<vmem>>) attributes {dimension_semantics = [#tpu.dimension_semantics<parallel>], iteration_bounds = array<i64: 1>, scalar_prefetch = 0 : i64, scratch_operands = 0 : i64, tpu.core_type = #tpu.core_type<tc>, window_params = [{transform_indices = @transform_0, window_bounds = array<i64: 8, 128>}, {transform_indices = @transform_1, window_bounds = array<i64: 8, 128>}]} {
    %c0 = arith.constant 0 : index
    %c0_0 = arith.constant 0 : index
    %0 = vector.load %arg1[%c0, %c0_0] : memref<8x128xf32, #tpu.memory_space<vmem>>, vector<8x128xf32>
    %1 = tpu.iota {dimensions = array<i32: 1>} : vector<8x128xi32>
    %c1_i32 = arith.constant 1 : i32
    %2 = vector.broadcast %c1_i32 : i32 to vector<8x128xi32>
    %3 = arith.andi %1, %2 : vector<8x128xi32>
    %c0_i32 = arith.constant 0 : i32
    %4 = vector.broadcast %c0_i32 : i32 to vector<8x128xi32>
    %5 = arith.cmpi eq, %3, %4 : vector<8x128xi32>
    %c127_i32 = arith.constant 127 : i32
    %6 = tpu.dynamic_rotate %0 by %c127_i32 dim 1 : vector<8x128xf32>, i32 -> vector<8x128xf32>
    %c1_i32_1 = arith.constant 1 : i32
    %7 = tpu.dynamic_rotate %0 by %c1_i32_1 dim 1 : vector<8x128xf32>, i32 -> vector<8x128xf32>
    %cst = arith.constant -1.000000e+00 : f32
    %8 = vector.broadcast %cst : f32 to vector<8x128xf32>
    %9 = arith.mulf %8, %7 : vector<8x128xf32>
    %cst_2 = arith.constant -1.000000e+00 : f32
    %10 = vector.broadcast %cst_2 : f32 to vector<8x128xf32>
    %11 = arith.mulf %10, %0 : vector<8x128xf32>
    %12 = arith.addf %9, %11 : vector<8x128xf32>
    %13 = arith.select %5, %6, %12 : vector<8x128xi1>, vector<8x128xf32>
    %c0_3 = arith.constant 0 : index
    %c0_4 = arith.constant 0 : index
    %14 = vector.load %arg2[%c0_3, %c0_4] : memref<8x128xf32, #tpu.memory_space<vmem>>, vector<8x128xf32>
    tpu.vector_store %arg2[%c0_3, %c0_4], %13 {strides = array<i32>} : memref<8x128xf32, #tpu.memory_space<vmem>>, vector<8x128xf32>,
    return
  }
  func.func @transform_0(%arg0: i32) -> (i32, i32) {
    %c0_i32 = arith.constant 0 : i32
    %c0_i32_0 = arith.constant 0 : i32
    return %arg0, %c0_i32 : i32, i32
  }
  func.func @transform_1(%arg0: i32) -> (i32, i32) {
    %c0_i32 = arith.constant 0 : i32
    %c0_i32_0 = arith.constant 0 : i32
    return %arg0, %c0_i32 : i32, i32
  }
}

</mosaic_0001>

<bundles_post_ra>
// kernel: tpu_custom_call.1
= control target key start
LH: loop header
LB: loop body
LE: loop exit
PB: predicated region body
PF: predicated region fallthrough
CT: control target
= control target key end

     0   :  { %6 = vsyncpa [#allocation3], 0  ;;  %s140_s0 = inlined_call_operand.hbm [shape: f32[8,128], index: 0, kind: input, shape index: {}]   ;;  %s141_s1 = inlined_call_operand.hbm [shape: f32[8,128], index: 1, kind: output, shape index: {}]  }
   0x1   :  { %7 = vsyncpa [#allocation4], 0  ;;  %s102_s6 = smov [#allocation2]   ;;  %s54_s10 = scalar_lea.hbm %s140_s0, 128 }
   0x2   :  { %s14_s7 = sshll.u32 %s102_s6, 4  ;;  %p55_p0 = scmp.ne.s32.totalorder %s140_s0, %s54_s10  ;;  %s15_s7 = int_to_ptr.vmem [resolvable:$true] %s14_s7 }
   0x3   :  { %p58_p1 = scmp.lt.u32.totalorder %s54_s10, %s140_s0 }
   0x5   :  { %p60_p2 = pnand %p58_p1, %p55_p0 }
   0x7   :  { %63 = shalt.err (!%p60_p2)
}
   0x8   :  { %s64_s15 = scalar_lea.vmem %s15_s7, 128  ;;  %p69_p4 = scmp.lt.s32.totalorder %s15_s7, %s15_s7 }
   0x9   :  { %p65_p3 = scmp.ne.s32.totalorder %s15_s7, %s64_s15  ;;  %p70_p5 = scmp.lt.s32.totalorder %s64_s15, %s64_s15 }
   0xb   :  { %p71_p6 = por %p70_p5, %p69_p4 }
   0xd   :  { %p72_p7 = pnand %p71_p6, %p65_p3 }
   0xf   :  { %75 = shalt.err (!%p72_p7)
}
  0x10   :  { %17 = dma.hbm_to_vmem [thread:$0]  %s140_s0, 128, %s15_s7, [#allocation3]  }
  0x11   :  { %98 = dma.done.wait [#allocation3], 128  }
  0x12   :  { %99 = vsyncadd [#allocation3], 4294967168  ;;  %v21_v0 = vld [vmem:[#allocation2] sm:$0xff]  ;;  %s103_s18 = smov 1   ;;  %s104_s19 = smov 127   ;;  %v22_v1 = vlaneseq }
  0x13   :  { %28 = vrot.lane.b32.xlu0 %v21_v0, %s103_s18  ;;  %v31_v4 = vmul.f32 -1.0, %v21_v0  ;;  %s105_s20 = smov [#allocation5]  }
  0x14   :  { %v23_v2 = vand.u32 127, %v22_v1  ;;  %s41_s21 = sshll.u32 %s105_s20, 4  ;;  %s42_s21 = int_to_ptr.vmem [resolvable:$true] %s41_s21 }
  0x15   :  { %s76_s0 = scalar_lea.vmem %s42_s21, 128  ;;  %p81_p9 = scmp.lt.s32.totalorder %s42_s21, %s42_s21 }
  0x16   :  { %v24_v3 = vand.u32 1, %v23_v2  ;;  %p77_p8 = scmp.ne.s32.totalorder %s42_s21, %s76_s0  ;;  %p82_p10 = scmp.lt.s32.totalorder %s76_s0, %s76_s0 }
  0x17   :  { %26 = vrot.lane.b32.xlu0 %v21_v0, %s104_s19 }
  0x18   :  { %vm25_vm0 = vcmp.eq.s32.totalorder %v24_v3, 0  ;;  %p83_p11 = por %p82_p10, %p81_p9 }
  0x1a   :  { %p84_p12 = pnand %p83_p11, %p77_p8 }
  0x85   :  { %v29_v5 = vpop.permute.xlu0 %28 }
  0x86   :  { %v30_v6 = vmul.f32 -1.0, %v29_v5 }
  0x88   :  { %v32_v7 = vadd.f32 %v31_v4, %v30_v6 }
  0x89   :  { %v27_v8 = vpop.permute.xlu0 %26 }
  0x8a   :  { %v33_v9 = vsel %vm25_vm0, %v27_v8, %v32_v7 }
  0x8b   :  { %34 = vst [vmem:[#allocation5] sm:$0xff] %v33_v9 }
  0x8c   :  { %87 = shalt.err (!%p84_p12)
}
  0x8d   :  { %s88_s24 = scalar_lea.hbm %s141_s1, 128 }
  0x8e   :  { %p89_p13 = scmp.ne.s32.totalorder %s141_s1, %s88_s24  ;;  %p92_p0 = scmp.lt.u32.totalorder %s88_s24, %s141_s1 }
  0x90   :  { %p94_p1 = pnand %p92_p0, %p89_p13 }
  0x92   :  { %97 = shalt.err (!%p94_p1)
}
  0x93   :  { %44 = dma.vmem_to_hbm [thread:$0]  %s42_s21, 128, %s141_s1, [#allocation4]  }
  0x94   :  { %100 = dma.done.wait [#allocation4], 128  }
  0x95   :  { %101 = vsyncadd [#allocation4], 4294967168 }
  0x96   :  { %48 = vsyncpa [#allocation3], 1 }
  0x97   :  { %49 = vsyncpa [#allocation4], 1 }

</bundles_post_ra>
